<compile_context>
chip_gen: v5e
topology: v5e:2x2
jax: 0.10.0
libtpu: 0.0.40
codegen_flags: <defaults>
</compile_context>

<pallas_src>
import functools
import math

import jax
import jax.numpy as jnp
from jax.experimental import pallas as pl
from jax.experimental.pallas import tpu as pltpu


# TODO(synk): the outer Decoder loop (external RNN / embedding submodules,
# sequential teacher forcing, argmax + data-dependent mask_fn and gathers) is
# host-level control flow over modules not defined in this file; only the
# per-step attention math is implemented as Pallas kernels.
# TODO(synk): keeping the cached projection VMEM-resident across decode steps
# (one pallas_call with a step grid axis, or cross-call semaphore futures)
# needs those surrounding ops in-kernel as well; here the hoist is realised at
# the Python level via precompute_attention_cache().


def _round_up(x, m):
    return ((x + m - 1) // m) * m


def _lcm(a, b):
    return a * b // math.gcd(a, b)


def _tensorcores_per_device():
    """2 on v7x (grid 'parallel' axes shard across its TensorCores), else 1."""
    try:
        kind = jax.devices()[0].device_kind.lower()
    except Exception:
        return 1
    return 2 if ("v7" in kind or "7x" in kind) else 1


def _choose_block_b(B, S, num_tc):
    """Batch-tile size TB.

    Single-TC chips (v5e/v6e): one grid step whenever it fits — extra steps
    on a serial grid only add ~0.35us/step pipeline overhead.
    v7x: split into >= num_tc steps when each step still keeps >= 256 fused
    rows, so the 'parallel' axis can be sharded over both TensorCores.
    """
    b_pad8 = _round_up(max(B, 1), 8)
    rows_cap = 2048                                  # keeps tiles tiny in VMEM for any H
    tb_cap = max(8, (rows_cap // max(S, 1)) // 8 * 8)
    tb = min(b_pad8, tb_cap)
    if num_tc >= 2:
        split = _round_up(pl.cdiv(b_pad8, num_tc), 8)
        if split < tb and split * S >= 256:
            tb = split
    if tb < b_pad8:
        # Multiple grid steps: the lane-dense (1, TB*S) output block wants
        # TB*S to be a multiple of 128 (unmasked stores).
        tb = _round_up(tb, _lcm(8, 128 // math.gcd(128, S)))
        if tb >= b_pad8:
            tb = b_pad8
    return tb


# ----------------------------------------------------------------------------
# One-time probe: is the (TB, S) -> (1, TB*S) value relayout (lane-dense
# output store) supported by this Mosaic build?  Fall back to the row-major
# store if not.
# ----------------------------------------------------------------------------
_LANE_DENSE_OK = None


def _lane_dense_supported():
    global _LANE_DENSE_OK
    if _LANE_DENSE_OK is None:
        def _probe_kernel(x_ref, o_ref):
            o_ref[...] = x_ref[...].reshape(1, 512)
        try:
            x = jnp.zeros((64, 8), jnp.float32)
            jax.block_until_ready(
                pl.pallas_call(
                    _probe_kernel,
                    out_shape=jax.ShapeDtypeStruct((1, 512), jnp.float32),
                )(x))
            _LANE_DENSE_OK = True
        except Exception:
            _LANE_DENSE_OK = False
    return _LANE_DENSE_OK


# ----------------------------------------------------------------------------
# Kernels
# ----------------------------------------------------------------------------
def _projection_kernel(x_ref, w1_ref, o_ref):
    # x_ref : (TB, S, H)  instance_hidden tile
    # w1_ref: (H, H)      top half of W
    # o_ref : (TB, S, H)  f32 cached projection  x @ W1
    tb, s, h = x_ref.shape
    x = x_ref[...].reshape(tb * s, h)                 # leading-dim merge (free)
    o_ref[...] = jnp.dot(x, w1_ref[...],
                         preferred_element_type=jnp.float32).reshape(tb, s, h)


def _attention_step_kernel(ret1_ref, r_ref, w2_ref, v_ref, o_ref, *,
                           activation, softmax, lane_dense):
    # ret1_ref: (TB, S, H)  cached instance_hidden @ W1  (f32)
    # r_ref   : (TB, H)     per-step query input (rnn_out / fc_output)
    # w2_ref  : (H, H)      bottom half of W
    # v_ref   : (1, H)      scoring vector (row layout -> VPU reduce)
    # o_ref   : (1, TB*S) lane-dense, or (TB, S) row-major fallback
    tb, s, h = ret1_ref.shape

    # Per-step projection: one small (TB,H)@(H,H) MXU push, broadcast over S.
    r_proj = jnp.dot(r_ref[...], w2_ref[...],
                     preferred_element_type=jnp.float32)            # (TB, H)
    ret = ret1_ref[...].astype(jnp.float32) + r_proj[:, None, :]    # == cat([x,r]) @ W
    if activation == "relu":
        ret = jnp.maximum(ret, 0.0)                                 # VPU
    else:
        ret = jnp.tanh(ret)                                         # EUP

    # Scores: VPU multiply + lane reduce instead of an N=1 matmul.
    v_row = v_ref[...].reshape(1, 1, h).astype(jnp.float32)
    scores = jnp.sum(ret * v_row, axis=-1)                          # (TB, S)

    if softmax:
        m = jnp.max(scores, axis=-1, keepdims=True)
        e = jnp.exp(scores - m)
        denom = jnp.sum(e, axis=-1, keepdims=True)
        scores = e * pl.reciprocal(denom, approx=True)              # EUP slot

    if lane_dense:
        # Lane-dense store: (TB, S) -> (1, TB*S); unmasked vst when TB*S%128==0.
        o_ref[...] = scores.reshape(1, tb * s).astype(o_ref.dtype)
    else:
        o_ref[...] = scores.astype(o_ref.dtype)


# ----------------------------------------------------------------------------
# Wrappers
# ----------------------------------------------------------------------------
def precompute_attention_cache(instance_hidden, W, v, *, block_b=None):
    """Once per decode sequence: hoist the decode-invariant projection.

    Returns (ret1, w2, v_row) with ret1 = instance_hidden @ W[0, :H]  (f32).
    """
    B, S, H = instance_hidden.shape
    w1 = W[0, :H, :]
    w2 = W[0, H:, :]
    v_row = v[0, :, 0].reshape(1, H).astype(jnp.float32)

    tb = _choose_block_b(B, S, _tensorcores_per_device()) if block_b is None \
        else int(block_b)
    num_blocks = pl.cdiv(B, tb)

    ret1 = pl.pallas_call(
        _projection_kernel,
        out_shape=jax.ShapeDtypeStruct((B, S, H), jnp.float32),
        grid_spec=pltpu.PrefetchScalarGridSpec(
            num_scalar_prefetch=0,
            grid=(num_blocks,),
            in_specs=[
                pl.BlockSpec((tb, S, H), lambda b: (b, 0, 0)),  # instance_hidden
                pl.BlockSpec((H, H), lambda b: (0, 0)),         # W top half
            ],
            out_specs=pl.BlockSpec((tb, S, H), lambda b: (b, 0, 0)),
        ),
        compiler_params=pltpu.CompilerParams(
            dimension_semantics=("parallel",),
        ),
    )(instance_hidden, w1)
    return ret1, w2, v_row


def attention_step(cache, step_hidden, *, activation="relu", softmax=True,
                   block_b=None, out_dtype=jnp.float32):
    """One decoding step.  `step_hidden` is the per-step (B, H) query input
    (rnn_out for the encoder attention, fc_output for the pointer scores).
    Returns scores/probabilities of shape (B, S)."""
    ret1, w2, v_row = cache
    B, S, H = ret1.shape
    if step_hidden.ndim == 3:
        step_hidden = step_hidden[:, 0, :]

    if block_b is None:
        tb = _choose_block_b(B, S, _tensorcores_per_device())
    else:
        tb = int(block_b)
        if tb % 8 != 0:
            raise ValueError("block_b must be a multiple of 8")
    num_blocks = pl.cdiv(B, tb)

    lane_dense = _lane_dense_supported() and (
        num_blocks == 1 or (tb * S) % 128 == 0)

    kernel = functools.partial(_attention_step_kernel, activation=activation,
                               softmax=softmax, lane_dense=lane_dense)
    if lane_dense:
        out_shape = jax.ShapeDtypeStruct((1, num_blocks * tb * S), out_dtype)
        out_spec = pl.BlockSpec((1, tb * S), lambda b: (0, b))
    else:
        out_shape = jax.ShapeDtypeStruct((num_blocks * tb, S), out_dtype)
        out_spec = pl.BlockSpec((tb, S), lambda b: (b, 0))

    out = pl.pallas_call(
        kernel,
        out_shape=out_shape,
        grid_spec=pltpu.PrefetchScalarGridSpec(
            num_scalar_prefetch=0,
            grid=(num_blocks,),
            in_specs=[
                pl.BlockSpec((tb, S, H), lambda b: (b, 0, 0)),  # cached projection
                pl.BlockSpec((tb, H), lambda b: (b, 0)),        # per-step query
                # TODO(synk): for large H on v7x, single-buffer these
                # grid-invariant weight specs (pl.Buffered(1) / scratch DMA).
                pl.BlockSpec((H, H), lambda b: (0, 0)),         # W bottom half
                pl.BlockSpec((1, H), lambda b: (0, 0)),         # v (row layout)
            ],
            out_specs=out_spec,
        ),
        compiler_params=pltpu.CompilerParams(
            dimension_semantics=("parallel",),
        ),
    )(ret1, step_hidden, w2, v_row)

    # Padded / ragged rows (if any) are discarded here.
    return out.reshape(num_blocks * tb, S)[:B]


def attention_forward(instance_hidden, rnn_out, W, v, *, block_b=None):
    """encoder_attn: softmax(bmm(relu(bmm(cat([x, rnn_out.expand]), W)), v), 1)."""
    cache = precompute_attention_cache(instance_hidden, W, v, block_b=block_b)
    probs = attention_step(cache, rnn_out, activation="relu", softmax=True,
                           block_b=block_b, out_dtype=instance_hidden.dtype)
    B, S, _ = instance_hidden.shape
    return probs.reshape(B, S, 1)


def pointer_scores_forward(instance_hidden, fc_output, W, v, *, block_b=None):
    """Pointer.forward tail: bmm(tanh(bmm(cat([x, fc_out.expand]), W)), v).squeeze(2)."""
    cache = precompute_attention_cache(instance_hidden, W, v, block_b=block_b)
    return attention_step(cache, fc_output, activation="tanh", softmax=False,
                          block_b=block_b, out_dtype=instance_hidden.dtype)


# ----------------------------------------------------------------------------
# Pure-JAX references (mirror the PyTorch forward exactly)
# ----------------------------------------------------------------------------
def attention_reference(instance_hidden, rnn_out, W, v):
    B, S, H = instance_hidden.shape
    hidden = jnp.concatenate(
        [instance_hidden, jnp.broadcast_to(rnn_out, (B, S, H))], axis=2)
    ret = jnp.einsum("bsk,kh->bsh", hidden, W[0])
    attns = jnp.einsum("bsh,ho->bso", jax.nn.relu(ret), v[0])
    return jax.nn.softmax(attns, axis=1)


def pointer_scores_reference(instance_hidden, fc_output, W, v):
    B, S, H = instance_hidden.shape
    hidden = jnp.concatenate(
        [instance_hidden, jnp.broadcast_to(fc_output, (B, S, H))], axis=2)
    ret = jnp.einsum("bsk,kh->bsh", hidden, W[0])
    return jnp.einsum("bsh,h->bs", jnp.tanh(ret), v[0, :, 0])


if __name__ == "__main__":
    key = jax.random.PRNGKey(0)
    k1, k2, k3, k4, k5, k6 = jax.random.split(key, 6)

    B, S, H = 64, 8, 32
    instance_hidden = jax.random.normal(k1, (B, S, H), dtype=jnp.float32)
    rnn_out = jax.random.normal(k2, (B, 1, H), dtype=jnp.float32)

    # Module __init__ uses zero parameters; use small deterministic random
    # values instead so the computation is non-degenerate.
    W = 0.1 * jax.random.normal(k3, (1, 2 * H, H), dtype=jnp.float32)
    v = 0.1 * jax.random.normal(k4, (1, H, 1), dtype=jnp.float32)

    ref = attention_reference(instance_hidden, rnn_out, W, v)

    # One-shot encoder attention (projection kernel + step kernel).
    out = jax.block_until_ready(attention_forward(instance_hidden, rnn_out, W, v))
    assert out.shape == (B, S, 1)
    assert jnp.allclose(out, ref, atol=2e-3, rtol=2e-3), "attention mismatch"

    # Hoisted cache reused across (simulated) decode steps: the projection
    # kernel runs once, only the cheap step kernel runs per step.
    cache = precompute_attention_cache(instance_hidden, W, v)
    rnn_steps = 0.5 * jax.random.normal(k5, (3, B, H), dtype=jnp.float32)
    for j in range(3):
        out_j = jax.block_until_ready(attention_step(cache, rnn_steps[j]))
        ref_j = attention_reference(instance_hidden, rnn_steps[j][:, None, :], W, v)
        assert jnp.allclose(out_j.reshape(B, S, 1), ref_j,
                            atol=2e-3, rtol=2e-3), f"decode-step {j} mismatch"

    # Multi-tile path (the v7x-style batch split), exercised explicitly so it
    # is covered on any chip generation.
    out_mb = jax.block_until_ready(
        attention_forward(instance_hidden, rnn_out, W, v, block_b=16))
    assert jnp.allclose(out_mb, ref, atol=2e-3, rtol=2e-3), "multi-tile mismatch"

    # Small, non-tile-aligned batch exercises the ragged last block (no pad).
    out_small = jax.block_until_ready(
        attention_forward(instance_hidden[:5], rnn_out[:5], W, v))
    assert out_small.shape == (5, S, 1)
    assert jnp.allclose(out_small, ref[:5], atol=2e-3, rtol=2e-3), \
        "ragged-batch mismatch"

    # Pointer-score path (tanh, no softmax) from Pointer.forward.
    fc_output = 0.5 * jax.random.normal(k6, (B, 1, H), dtype=jnp.float32)
    p_ref = pointer_scores_reference(instance_hidden, fc_output, W, v)
    p_out = jax.block_until_ready(
        pointer_scores_forward(instance_hidden, fc_output, W, v))
    assert p_out.shape == (B, S)
    assert jnp.allclose(p_out, p_ref, atol=1e-2, rtol=1e-2), "pointer-score mismatch"

    print("KERNEL_OK")
</pallas_src>

<mosaic_0001>
module attributes {stable_mosaic.version = 11 : i64} {
  func.func @_projection_kernel(%arg0: i32, %arg1: memref<64x8x32xf32, #tpu.memory_space<vmem>>, %arg2: memref<32x32xf32, #tpu.memory_space<vmem>>, %arg3: memref<64x8x32xf32, #tpu.memory_space<vmem>>) attributes {dimension_semantics = [#tpu.dimension_semantics<parallel>], iteration_bounds = array<i64: 1>, scalar_prefetch = 0 : i64, scratch_operands = 0 : i64, tpu.core_type = #tpu.core_type<tc>, window_params = [{transform_indices = @transform_0, window_bounds = array<i64: 64, 8, 32>}, {pipeline_mode = #tpu.pipeline_mode<synchronous>, transform_indices = @transform_1, window_bounds = array<i64: 32, 32>}, {transform_indices = @transform_2, window_bounds = array<i64: 64, 8, 32>}]} {
    %c0 = arith.constant 0 : index
    %c0_0 = arith.constant 0 : index
    %c0_1 = arith.constant 0 : index
    %0 = vector.load %arg1[%c0, %c0_0, %c0_1] : memref<64x8x32xf32, #tpu.memory_space<vmem>>, vector<64x8x32xf32>
    %1 = vector.shape_cast %0 : vector<64x8x32xf32> to vector<512x32xf32>
    %c0_2 = arith.constant 0 : index
    %c0_3 = arith.constant 0 : index
    %2 = vector.load %arg2[%c0_2, %c0_3] : memref<32x32xf32, #tpu.memory_space<vmem>>, vector<32x32xf32>
    %cst = arith.constant dense<0.000000e+00> : vector<512x32xf32>
    %3 = tpu.matmul %1, %2, %cst {dimension_numbers = #tpu.dot_dimension_numbers<[1], [0], [0], [1], [0, 0, 1, 1], [], []>} : vector<512x32xf32>, vector<32x32xf32>, vector<512x32xf32> -> vector<512x32xf32>
    %4 = vector.shape_cast %3 : vector<512x32xf32> to vector<64x8x32xf32>
    %c0_4 = arith.constant 0 : index
    %c0_5 = arith.constant 0 : index
    %c0_6 = arith.constant 0 : index
    %5 = vector.load %arg3[%c0_4, %c0_5, %c0_6] : memref<64x8x32xf32, #tpu.memory_space<vmem>>, vector<64x8x32xf32>
    tpu.vector_store %arg3[%c0_4, %c0_5, %c0_6], %4 {strides = array<i32>} : memref<64x8x32xf32, #tpu.memory_space<vmem>>, vector<64x8x32xf32>,
    return
  }
  func.func @transform_0(%arg0: i32) -> (i32, i32, i32) {
    %c0_i32 = arith.constant 0 : i32
    %c0_i32_0 = arith.constant 0 : i32
    %c0_i32_1 = arith.constant 0 : i32
    return %arg0, %c0_i32, %c0_i32_0 : i32, i32, i32
  }
  func.func @transform_1(%arg0: i32) -> (i32, i32) {
    %c0_i32 = arith.constant 0 : i32
    %c0_i32_0 = arith.constant 0 : i32
    %c0_i32_1 = arith.constant 0 : i32
    return %c0_i32, %c0_i32_0 : i32, i32
  }
  func.func @transform_2(%arg0: i32) -> (i32, i32, i32) {
    %c0_i32 = arith.constant 0 : i32
    %c0_i32_0 = arith.constant 0 : i32
    %c0_i32_1 = arith.constant 0 : i32
    return %arg0, %c0_i32, %c0_i32_0 : i32, i32, i32
  }
}

</mosaic_0001>

<bundles_post_ra>
// kernel: tpu_custom_call.1
= control target key start
LH: loop header
LB: loop body
LE: loop exit
PB: predicated region body
PF: predicated region fallthrough
CT: control target
= control target key end

     0   :  { %vm79_vm0 = vcmask 261120   ;;  %s1164_s1 = inlined_call_operand.vmem [shape: f32[32,32], index: 1, kind: input, shape index: {}]   ;;  %s1165_s0 = inlined_call_operand.vmem [shape: f32[64,8,32], index: 0, kind: input, shape index: {}]   ;;  %s1166_s2 = inlined_call_operand.vmem [shape: f32[64,8,32], index: 2, kind: output, shape index: {}]  }
   0x1   :  { %v78_v0 = vld [vmem:[%s1164_s1 + $0x18] sm:$0xff]  ;;  %v77_v1 = vld [vmem:[%s1164_s1 + $0x10] sm:$0xff]  ;;  %v76_v2 = vld [vmem:[%s1164_s1 + $0x8] sm:$0xff] }
   0x2   :  { %614 = vmatpush.msra.mxu2 %v78_v0  ;;  %615 = vmatpush.msra.mxu3 %v78_v0  ;;  %v75_v3 = vld [vmem:[%s1164_s1] sm:$0xff]  ;;  %v44_v8 = vld [vmem:[%s1165_s0 + $0x108] sm:$0xff]  ;;  %v45_v12 = vld [vmem:[%s1165_s0 + $0x110] sm:$0xff] }
   0x3   :  { %284 = vmatpush.msra.mxu0 %v78_v0  ;;  %613 = vmatpush.msra.mxu1 %v78_v0  ;;  %v43_v4 = vld [vmem:[%s1165_s0 + $0x100] sm:$0xff]  ;;  %v60_v9 = vld [vmem:[%s1165_s0 + $0x188] sm:$0xff]  ;;  %v61_v13 = vld [vmem:[%s1165_s0 + $0x190] sm:$0xff] }
   0x4   :  { %617 = vmatpush.msra.mxu2 %v77_v1  ;;  %618 = vmatpush.msra.mxu3 %v77_v1  ;;  %v59_v5 = vld [vmem:[%s1165_s0 + $0x180] sm:$0xff]  ;;  %v12_v10 = vld [vmem:[%s1165_s0 + $0x8] sm:$0xff]  ;;  %v13_v14 = vld [vmem:[%s1165_s0 + $0x10] sm:$0xff] }
   0x5   :  { %285 = vmatpush.msra.mxu0 %v77_v1  ;;  %616 = vmatpush.msra.mxu1 %v77_v1  ;;  %v11_v6 = vld [vmem:[%s1165_s0] sm:$0xff]  ;;  %v28_v11 = vld [vmem:[%s1165_s0 + $0x88] sm:$0xff]  ;;  %v29_v15 = vld [vmem:[%s1165_s0 + $0x90] sm:$0xff] }
   0x6   :  { %620 = vmatpush.msra.mxu2 %v76_v2  ;;  %621 = vmatpush.msra.mxu3 %v76_v2  ;;  %v27_v7 = vld [vmem:[%s1165_s0 + $0x80] sm:$0xff]  ;;  %v46_v16 = vld [vmem:[%s1165_s0 + $0x118] sm:$0xff]  ;;  %v48_v24 = vld [vmem:[%s1165_s0 + $0x128] sm:$0xff] }
   0x7   :  { %286 = vmatpush.msra.mxu0 %v76_v2  ;;  %619 = vmatpush.msra.mxu1 %v76_v2  ;;  %v62_v17 = vld [vmem:[%s1165_s0 + $0x198] sm:$0xff]  ;;  %v47_v20 = vld [vmem:[%s1165_s0 + $0x120] sm:$0xff]  ;;  %v64_v25 = vld [vmem:[%s1165_s0 + $0x1a8] sm:$0xff] }
   0x8   :  { %623 = vmatpush.msra.mxu2 %v75_v3  ;;  %624 = vmatpush.msra.mxu3 %v75_v3  ;;  %v14_v18 = vld [vmem:[%s1165_s0 + $0x18] sm:$0xff]  ;;  %v63_v21 = vld [vmem:[%s1165_s0 + $0x1a0] sm:$0xff]  ;;  %v16_v26 = vld [vmem:[%s1165_s0 + $0x28] sm:$0xff] }
   0x9   :  { %581 = vmatmul.msk.f32.vlgmr.msra.gmra.mxu2 %vm79_vm0, %v43_v4  ;;  %597 = vmatmul.msk.f32.vlgmr.msra.gmra.mxu3 %vm79_vm0, %v59_v5  ;;  %v30_v19 = vld [vmem:[%s1165_s0 + $0x98] sm:$0xff]  ;;  %v15_v22 = vld [vmem:[%s1165_s0 + $0x20] sm:$0xff]  ;;  %v32_v27 = vld [vmem:[%s1165_s0 + $0xa8] sm:$0xff] }
   0xa   :  { %287 = vmatpush.msra.mxu0 %v75_v3  ;;  %622 = vmatpush.msra.mxu1 %v75_v3  ;;  %v31_v23 = vld [vmem:[%s1165_s0 + $0xa0] sm:$0xff]  ;;  %v49_v28 = vld [vmem:[%s1165_s0 + $0x130] sm:$0xff]  ;;  %v50_v32 = vld [vmem:[%s1165_s0 + $0x138] sm:$0xff] }
   0xb   :  { %549 = vmatmul.msk.f32.vlgmr.msra.gmra.mxu0 %vm79_vm0, %v11_v6  ;;  %565 = vmatmul.msk.f32.vlgmr.msra.gmra.mxu1 %vm79_vm0, %v27_v7  ;;  %v65_v29 = vld [vmem:[%s1165_s0 + $0x1b0] sm:$0xff]  ;;  %v66_v33 = vld [vmem:[%s1165_s0 + $0x1b8] sm:$0xff]  ;;  %v51_v36 = vld [vmem:[%s1165_s0 + $0x140] sm:$0xff] }
   0xc   :  { %v17_v30 = vld [vmem:[%s1165_s0 + $0x30] sm:$0xff]  ;;  %v18_v34 = vld [vmem:[%s1165_s0 + $0x38] sm:$0xff]  ;;  %v67_v37 = vld [vmem:[%s1165_s0 + $0x1c0] sm:$0xff] }
   0xd   :  { %v33_v31 = vld [vmem:[%s1165_s0 + $0xb0] sm:$0xff]  ;;  %v34_v35 = vld [vmem:[%s1165_s0 + $0xb8] sm:$0xff]  ;;  %v19_v38 = vld [vmem:[%s1165_s0 + $0x40] sm:$0xff] }
   0xe   :  { %v35_v39 = vld [vmem:[%s1165_s0 + $0xc0] sm:$0xff]  ;;  %v52_v40 = vld [vmem:[%s1165_s0 + $0x148] sm:$0xff]  ;;  %v53_v44 = vld [vmem:[%s1165_s0 + $0x150] sm:$0xff] }
   0xf   :  { %v68_v41 = vld [vmem:[%s1165_s0 + $0x1c8] sm:$0xff]  ;;  %v69_v45 = vld [vmem:[%s1165_s0 + $0x1d0] sm:$0xff]  ;;  %v54_v48 = vld [vmem:[%s1165_s0 + $0x158] sm:$0xff] }
  0x10   :  { %v20_v42 = vld [vmem:[%s1165_s0 + $0x48] sm:$0xff]  ;;  %v21_v46 = vld [vmem:[%s1165_s0 + $0x50] sm:$0xff]  ;;  %v70_v49 = vld [vmem:[%s1165_s0 + $0x1d8] sm:$0xff] }
  0x11   :  { %582 = vmatmul.msk.f32.gmra.mxu2 %vm79_vm0, %v44_v8  ;;  %598 = vmatmul.msk.f32.gmra.mxu3 %vm79_vm0, %v60_v9  ;;  %v36_v43 = vld [vmem:[%s1165_s0 + $0xc8] sm:$0xff]  ;;  %v37_v47 = vld [vmem:[%s1165_s0 + $0xd0] sm:$0xff]  ;;  %v22_v50 = vld [vmem:[%s1165_s0 + $0x58] sm:$0xff] }
  0x12   :  { %v38_v51 = vld [vmem:[%s1165_s0 + $0xd8] sm:$0xff]  ;;  %v55_v52 = vld [vmem:[%s1165_s0 + $0x160] sm:$0xff]  ;;  %v56_v56 = vld [vmem:[%s1165_s0 + $0x168] sm:$0xff] }
  0x13   :  { %550 = vmatmul.msk.f32.gmra.mxu0 %vm79_vm0, %v12_v10  ;;  %566 = vmatmul.msk.f32.gmra.mxu1 %vm79_vm0, %v28_v11  ;;  %v71_v53 = vld [vmem:[%s1165_s0 + $0x1e0] sm:$0xff]  ;;  %v72_v57 = vld [vmem:[%s1165_s0 + $0x1e8] sm:$0xff]  ;;  %v57_v60 = vld [vmem:[%s1165_s0 + $0x170] sm:$0xff] }
  0x14   :  { %v23_v54 = vld [vmem:[%s1165_s0 + $0x60] sm:$0xff]  ;;  %v24_v58 = vld [vmem:[%s1165_s0 + $0x68] sm:$0xff]  ;;  %v73_v61 = vld [vmem:[%s1165_s0 + $0x1f0] sm:$0xff] }
  0x15   :  { %v39_v55 = vld [vmem:[%s1165_s0 + $0xe0] sm:$0xff]  ;;  %v40_v59 = vld [vmem:[%s1165_s0 + $0xe8] sm:$0xff]  ;;  %v25_v62 = vld [vmem:[%s1165_s0 + $0x70] sm:$0xff] }
  0x16   :  { %v41_v63 = vld [vmem:[%s1165_s0 + $0xf0] sm:$0xff]  ;;  %v58_v0 = vld [vmem:[%s1165_s0 + $0x178] sm:$0xff] }
  0x17   :  { %v74_v1 = vld [vmem:[%s1165_s0 + $0x1f8] sm:$0xff] }
  0x18   :  { %v26_v2 = vld [vmem:[%s1165_s0 + $0x78] sm:$0xff] }
  0x19   :  { %583 = vmatmul.msk.f32.gmra.mxu2 %vm79_vm0, %v45_v12  ;;  %599 = vmatmul.msk.f32.gmra.mxu3 %vm79_vm0, %v61_v13  ;;  %v42_v3 = vld [vmem:[%s1165_s0 + $0xf8] sm:$0xff] }
  0x1b   :  { %551 = vmatmul.msk.f32.gmra.mxu0 %vm79_vm0, %v13_v14  ;;  %567 = vmatmul.msk.f32.gmra.mxu1 %vm79_vm0, %v29_v15 }
  0x21   :  { %584 = vmatmul.msk.f32.gmra.mxu2 %vm79_vm0, %v46_v16  ;;  %600 = vmatmul.msk.f32.gmra.mxu3 %vm79_vm0, %v62_v17 }
  0x23   :  { %552 = vmatmul.msk.f32.gmra.mxu0 %vm79_vm0, %v14_v18  ;;  %568 = vmatmul.msk.f32.gmra.mxu1 %vm79_vm0, %v30_v19 }
  0x29   :  { %585 = vmatmul.msk.f32.gmra.mxu2 %vm79_vm0, %v47_v20  ;;  %601 = vmatmul.msk.f32.gmra.mxu3 %vm79_vm0, %v63_v21 }
  0x2b   :  { %553 = vmatmul.msk.f32.gmra.mxu0 %vm79_vm0, %v15_v22  ;;  %569 = vmatmul.msk.f32.gmra.mxu1 %vm79_vm0, %v31_v23 }
  0x31   :  { %586 = vmatmul.msk.f32.gmra.mxu2 %vm79_vm0, %v48_v24  ;;  %602 = vmatmul.msk.f32.gmra.mxu3 %vm79_vm0, %v64_v25 }
  0x33   :  { %554 = vmatmul.msk.f32.gmra.mxu0 %vm79_vm0, %v16_v26  ;;  %570 = vmatmul.msk.f32.gmra.mxu1 %vm79_vm0, %v32_v27 }
  0x39   :  { %587 = vmatmul.msk.f32.gmra.mxu2 %vm79_vm0, %v49_v28  ;;  %603 = vmatmul.msk.f32.gmra.mxu3 %vm79_vm0, %v65_v29 }
  0x3b   :  { %555 = vmatmul.msk.f32.gmra.mxu0 %vm79_vm0, %v17_v30  ;;  %571 = vmatmul.msk.f32.gmra.mxu1 %vm79_vm0, %v33_v31 }
  0x41   :  { %588 = vmatmul.msk.f32.gmra.mxu2 %vm79_vm0, %v50_v32  ;;  %604 = vmatmul.msk.f32.gmra.mxu3 %vm79_vm0, %v66_v33 }
  0x43   :  { %556 = vmatmul.msk.f32.gmra.mxu0 %vm79_vm0, %v18_v34  ;;  %572 = vmatmul.msk.f32.gmra.mxu1 %vm79_vm0, %v34_v35 }
  0x49   :  { %589 = vmatmul.msk.f32.gmra.mxu2 %vm79_vm0, %v51_v36  ;;  %605 = vmatmul.msk.f32.gmra.mxu3 %vm79_vm0, %v67_v37 }
  0x4b   :  { %557 = vmatmul.msk.f32.gmra.mxu0 %vm79_vm0, %v19_v38  ;;  %573 = vmatmul.msk.f32.gmra.mxu1 %vm79_vm0, %v35_v39 }
  0x51   :  { %590 = vmatmul.msk.f32.gmra.mxu2 %vm79_vm0, %v52_v40  ;;  %606 = vmatmul.msk.f32.gmra.mxu3 %vm79_vm0, %v68_v41 }
  0x53   :  { %558 = vmatmul.msk.f32.gmra.mxu0 %vm79_vm0, %v20_v42  ;;  %574 = vmatmul.msk.f32.gmra.mxu1 %vm79_vm0, %v36_v43 }
  0x59   :  { %591 = vmatmul.msk.f32.gmra.mxu2 %vm79_vm0, %v53_v44  ;;  %607 = vmatmul.msk.f32.gmra.mxu3 %vm79_vm0, %v69_v45 }
  0x5b   :  { %559 = vmatmul.msk.f32.gmra.mxu0 %vm79_vm0, %v21_v46  ;;  %575 = vmatmul.msk.f32.gmra.mxu1 %vm79_vm0, %v37_v47 }
  0x61   :  { %592 = vmatmul.msk.f32.gmra.mxu2 %vm79_vm0, %v54_v48  ;;  %608 = vmatmul.msk.f32.gmra.mxu3 %vm79_vm0, %v70_v49 }
  0x63   :  { %560 = vmatmul.msk.f32.gmra.mxu0 %vm79_vm0, %v22_v50  ;;  %576 = vmatmul.msk.f32.gmra.mxu1 %vm79_vm0, %v38_v51 }
  0x69   :  { %593 = vmatmul.msk.f32.gmra.mxu2 %vm79_vm0, %v55_v52  ;;  %609 = vmatmul.msk.f32.gmra.mxu3 %vm79_vm0, %v71_v53 }
  0x6b   :  { %561 = vmatmul.msk.f32.gmra.mxu0 %vm79_vm0, %v23_v54  ;;  %577 = vmatmul.msk.f32.gmra.mxu1 %vm79_vm0, %v39_v55 }
  0x71   :  { %594 = vmatmul.msk.f32.gmra.mxu2 %vm79_vm0, %v56_v56  ;;  %610 = vmatmul.msk.f32.gmra.mxu3 %vm79_vm0, %v72_v57 }
  0x73   :  { %562 = vmatmul.msk.f32.gmra.mxu0 %vm79_vm0, %v24_v58  ;;  %578 = vmatmul.msk.f32.gmra.mxu1 %vm79_vm0, %v40_v59 }
  0x79   :  { %595 = vmatmul.msk.f32.gmra.mxu2 %vm79_vm0, %v57_v60  ;;  %611 = vmatmul.msk.f32.gmra.mxu3 %vm79_vm0, %v73_v61 }
  0x7b   :  { %563 = vmatmul.msk.f32.gmra.mxu0 %vm79_vm0, %v25_v62  ;;  %579 = vmatmul.msk.f32.gmra.mxu1 %vm79_vm0, %v41_v63 }
  0x81   :  { %596 = vmatmul.msk.f32.gmra.mxu2 %vm79_vm0, %v58_v0  ;;  %612 = vmatmul.msk.f32.gmra.mxu3 %vm79_vm0, %v74_v1 }
  0x83   :  { %564 = vmatmul.msk.f32.gmra.mxu0 %vm79_vm0, %v26_v2  ;;  %580 = vmatmul.msk.f32.gmra.mxu1 %vm79_vm0, %v42_v3 }
  0x88   :  { %v289_v4 = vpop.f32.mrf.mxu0  ;;  %v337_v5 = vpop.f32.mrf.mxu1 }
  0x89   :  { %481 = vst.msk [vmem:[%s1166_s2] sm:$0xff] %vm79_vm0, %v289_v4 }
  0x8a   :  { %497 = vst.msk [vmem:[%s1166_s2 + $0x80] sm:$0xff] %vm79_vm0, %v337_v5 }
  0x8c   :  { %v385_v6 = vpop.f32.mrf.mxu2  ;;  %v433_v7 = vpop.f32.mrf.mxu3 }
  0x8d   :  { %513 = vst.msk [vmem:[%s1166_s2 + $0x100] sm:$0xff] %vm79_vm0, %v385_v6 }
  0x8e   :  { %529 = vst.msk [vmem:[%s1166_s2 + $0x180] sm:$0xff] %vm79_vm0, %v433_v7 }
  0x90   :  { %v292_v8 = vpop.f32.mrf.mxu0  ;;  %v340_v9 = vpop.f32.mrf.mxu1 }
  0x91   :  { %482 = vst.msk [vmem:[%s1166_s2 + $0x8] sm:$0xff] %vm79_vm0, %v292_v8 }
  0x92   :  { %498 = vst.msk [vmem:[%s1166_s2 + $0x88] sm:$0xff] %vm79_vm0, %v340_v9 }
  0x94   :  { %v388_v10 = vpop.f32.mrf.mxu2  ;;  %v436_v11 = vpop.f32.mrf.mxu3 }
  0x95   :  { %514 = vst.msk [vmem:[%s1166_s2 + $0x108] sm:$0xff] %vm79_vm0, %v388_v10 }
  0x96   :  { %530 = vst.msk [vmem:[%s1166_s2 + $0x188] sm:$0xff] %vm79_vm0, %v436_v11 }
  0x98   :  { %v295_v12 = vpop.f32.mrf.mxu0  ;;  %v343_v13 = vpop.f32.mrf.mxu1 }
  0x99   :  { %483 = vst.msk [vmem:[%s1166_s2 + $0x10] sm:$0xff] %vm79_vm0, %v295_v12 }
  0x9a   :  { %499 = vst.msk [vmem:[%s1166_s2 + $0x90] sm:$0xff] %vm79_vm0, %v343_v13 }
  0x9c   :  { %v391_v14 = vpop.f32.mrf.mxu2  ;;  %v439_v15 = vpop.f32.mrf.mxu3 }
  0x9d   :  { %515 = vst.msk [vmem:[%s1166_s2 + $0x110] sm:$0xff] %vm79_vm0, %v391_v14 }
  0x9e   :  { %531 = vst.msk [vmem:[%s1166_s2 + $0x190] sm:$0xff] %vm79_vm0, %v439_v15 }
  0xa0   :  { %v298_v16 = vpop.f32.mrf.mxu0  ;;  %v346_v17 = vpop.f32.mrf.mxu1 }
  0xa1   :  { %484 = vst.msk [vmem:[%s1166_s2 + $0x18] sm:$0xff] %vm79_vm0, %v298_v16 }
  0xa2   :  { %500 = vst.msk [vmem:[%s1166_s2 + $0x98] sm:$0xff] %vm79_vm0, %v346_v17 }
  0xa4   :  { %v394_v18 = vpop.f32.mrf.mxu2  ;;  %v442_v19 = vpop.f32.mrf.mxu3 }
  0xa5   :  { %516 = vst.msk [vmem:[%s1166_s2 + $0x118] sm:$0xff] %vm79_vm0, %v394_v18 }
  0xa6   :  { %532 = vst.msk [vmem:[%s1166_s2 + $0x198] sm:$0xff] %vm79_vm0, %v442_v19 }
  0xa8   :  { %v301_v20 = vpop.f32.mrf.mxu0  ;;  %v349_v21 = vpop.f32.mrf.mxu1 }
  0xa9   :  { %485 = vst.msk [vmem:[%s1166_s2 + $0x20] sm:$0xff] %vm79_vm0, %v301_v20 }
  0xaa   :  { %501 = vst.msk [vmem:[%s1166_s2 + $0xa0] sm:$0xff] %vm79_vm0, %v349_v21 }
  0xac   :  { %v397_v22 = vpop.f32.mrf.mxu2  ;;  %v445_v23 = vpop.f32.mrf.mxu3 }
  0xad   :  { %517 = vst.msk [vmem:[%s1166_s2 + $0x120] sm:$0xff] %vm79_vm0, %v397_v22 }
  0xae   :  { %533 = vst.msk [vmem:[%s1166_s2 + $0x1a0] sm:$0xff] %vm79_vm0, %v445_v23 }
  0xb0   :  { %v304_v24 = vpop.f32.mrf.mxu0  ;;  %v352_v25 = vpop.f32.mrf.mxu1 }
  0xb1   :  { %486 = vst.msk [vmem:[%s1166_s2 + $0x28] sm:$0xff] %vm79_vm0, %v304_v24 }
  0xb2   :  { %502 = vst.msk [vmem:[%s1166_s2 + $0xa8] sm:$0xff] %vm79_vm0, %v352_v25 }
  0xb4   :  { %v400_v26 = vpop.f32.mrf.mxu2  ;;  %v448_v27 = vpop.f32.mrf.mxu3 }
  0xb5   :  { %518 = vst.msk [vmem:[%s1166_s2 + $0x128] sm:$0xff] %vm79_vm0, %v400_v26 }
  0xb6   :  { %534 = vst.msk [vmem:[%s1166_s2 + $0x1a8] sm:$0xff] %vm79_vm0, %v448_v27 }
  0xb8   :  { %v307_v28 = vpop.f32.mrf.mxu0  ;;  %v355_v29 = vpop.f32.mrf.mxu1 }
  0xb9   :  { %487 = vst.msk [vmem:[%s1166_s2 + $0x30] sm:$0xff] %vm79_vm0, %v307_v28 }
  0xba   :  { %503 = vst.msk [vmem:[%s1166_s2 + $0xb0] sm:$0xff] %vm79_vm0, %v355_v29 }
  0xbc   :  { %v403_v30 = vpop.f32.mrf.mxu2  ;;  %v451_v31 = vpop.f32.mrf.mxu3 }
  0xbd   :  { %519 = vst.msk [vmem:[%s1166_s2 + $0x130] sm:$0xff] %vm79_vm0, %v403_v30 }
  0xbe   :  { %535 = vst.msk [vmem:[%s1166_s2 + $0x1b0] sm:$0xff] %vm79_vm0, %v451_v31 }
  0xc0   :  { %v310_v32 = vpop.f32.mrf.mxu0  ;;  %v358_v33 = vpop.f32.mrf.mxu1 }
  0xc1   :  { %488 = vst.msk [vmem:[%s1166_s2 + $0x38] sm:$0xff] %vm79_vm0, %v310_v32 }
  0xc2   :  { %504 = vst.msk [vmem:[%s1166_s2 + $0xb8] sm:$0xff] %vm79_vm0, %v358_v33 }
  0xc4   :  { %v406_v34 = vpop.f32.mrf.mxu2  ;;  %v454_v35 = vpop.f32.mrf.mxu3 }
  0xc5   :  { %520 = vst.msk [vmem:[%s1166_s2 + $0x138] sm:$0xff] %vm79_vm0, %v406_v34 }
  0xc6   :  { %536 = vst.msk [vmem:[%s1166_s2 + $0x1b8] sm:$0xff] %vm79_vm0, %v454_v35 }
  0xc8   :  { %v313_v36 = vpop.f32.mrf.mxu0  ;;  %v361_v37 = vpop.f32.mrf.mxu1 }
  0xc9   :  { %489 = vst.msk [vmem:[%s1166_s2 + $0x40] sm:$0xff] %vm79_vm0, %v313_v36 }
  0xca   :  { %505 = vst.msk [vmem:[%s1166_s2 + $0xc0] sm:$0xff] %vm79_vm0, %v361_v37 }
  0xcc   :  { %v409_v38 = vpop.f32.mrf.mxu2  ;;  %v457_v39 = vpop.f32.mrf.mxu3 }
  0xcd   :  { %521 = vst.msk [vmem:[%s1166_s2 + $0x140] sm:$0xff] %vm79_vm0, %v409_v38 }
  0xce   :  { %537 = vst.msk [vmem:[%s1166_s2 + $0x1c0] sm:$0xff] %vm79_vm0, %v457_v39 }
  0xd0   :  { %v316_v40 = vpop.f32.mrf.mxu0  ;;  %v364_v41 = vpop.f32.mrf.mxu1 }
  0xd1   :  { %490 = vst.msk [vmem:[%s1166_s2 + $0x48] sm:$0xff] %vm79_vm0, %v316_v40 }
  0xd2   :  { %506 = vst.msk [vmem:[%s1166_s2 + $0xc8] sm:$0xff] %vm79_vm0, %v364_v41 }
  0xd4   :  { %v412_v42 = vpop.f32.mrf.mxu2  ;;  %v460_v43 = vpop.f32.mrf.mxu3 }
  0xd5   :  { %522 = vst.msk [vmem:[%s1166_s2 + $0x148] sm:$0xff] %vm79_vm0, %v412_v42 }
  0xd6   :  { %538 = vst.msk [vmem:[%s1166_s2 + $0x1c8] sm:$0xff] %vm79_vm0, %v460_v43 }
  0xd8   :  { %v319_v44 = vpop.f32.mrf.mxu0  ;;  %v367_v45 = vpop.f32.mrf.mxu1 }
  0xd9   :  { %491 = vst.msk [vmem:[%s1166_s2 + $0x50] sm:$0xff] %vm79_vm0, %v319_v44 }
  0xda   :  { %507 = vst.msk [vmem:[%s1166_s2 + $0xd0] sm:$0xff] %vm79_vm0, %v367_v45 }
  0xdc   :  { %v415_v46 = vpop.f32.mrf.mxu2  ;;  %v463_v47 = vpop.f32.mrf.mxu3 }
  0xdd   :  { %523 = vst.msk [vmem:[%s1166_s2 + $0x150] sm:$0xff] %vm79_vm0, %v415_v46 }
  0xde   :  { %539 = vst.msk [vmem:[%s1166_s2 + $0x1d0] sm:$0xff] %vm79_vm0, %v463_v47 }
  0xe0   :  { %v322_v48 = vpop.f32.mrf.mxu0  ;;  %v370_v49 = vpop.f32.mrf.mxu1 }
  0xe1   :  { %492 = vst.msk [vmem:[%s1166_s2 + $0x58] sm:$0xff] %vm79_vm0, %v322_v48 }
  0xe2   :  { %508 = vst.msk [vmem:[%s1166_s2 + $0xd8] sm:$0xff] %vm79_vm0, %v370_v49 }
  0xe4   :  { %v418_v50 = vpop.f32.mrf.mxu2  ;;  %v466_v51 = vpop.f32.mrf.mxu3 }
  0xe5   :  { %524 = vst.msk [vmem:[%s1166_s2 + $0x158] sm:$0xff] %vm79_vm0, %v418_v50 }
  0xe6   :  { %540 = vst.msk [vmem:[%s1166_s2 + $0x1d8] sm:$0xff] %vm79_vm0, %v466_v51 }
  0xe8   :  { %v325_v52 = vpop.f32.mrf.mxu0  ;;  %v373_v53 = vpop.f32.mrf.mxu1 }
  0xe9   :  { %493 = vst.msk [vmem:[%s1166_s2 + $0x60] sm:$0xff] %vm79_vm0, %v325_v52 }
  0xea   :  { %509 = vst.msk [vmem:[%s1166_s2 + $0xe0] sm:$0xff] %vm79_vm0, %v373_v53 }
  0xec   :  { %v421_v54 = vpop.f32.mrf.mxu2  ;;  %v469_v55 = vpop.f32.mrf.mxu3 }
  0xed   :  { %525 = vst.msk [vmem:[%s1166_s2 + $0x160] sm:$0xff] %vm79_vm0, %v421_v54 }
  0xee   :  { %541 = vst.msk [vmem:[%s1166_s2 + $0x1e0] sm:$0xff] %vm79_vm0, %v469_v55 }
  0xf0   :  { %v328_v56 = vpop.f32.mrf.mxu0  ;;  %v376_v57 = vpop.f32.mrf.mxu1 }
  0xf1   :  { %494 = vst.msk [vmem:[%s1166_s2 + $0x68] sm:$0xff] %vm79_vm0, %v328_v56 }
  0xf2   :  { %510 = vst.msk [vmem:[%s1166_s2 + $0xe8] sm:$0xff] %vm79_vm0, %v376_v57 }
  0xf4   :  { %v424_v58 = vpop.f32.mrf.mxu2  ;;  %v472_v59 = vpop.f32.mrf.mxu3 }
  0xf5   :  { %526 = vst.msk [vmem:[%s1166_s2 + $0x168] sm:$0xff] %vm79_vm0, %v424_v58 }
  0xf6   :  { %542 = vst.msk [vmem:[%s1166_s2 + $0x1e8] sm:$0xff] %vm79_vm0, %v472_v59 }
  0xf8   :  { %v331_v60 = vpop.f32.mrf.mxu0  ;;  %v379_v61 = vpop.f32.mrf.mxu1 }
  0xf9   :  { %495 = vst.msk [vmem:[%s1166_s2 + $0x70] sm:$0xff] %vm79_vm0, %v331_v60 }
  0xfa   :  { %511 = vst.msk [vmem:[%s1166_s2 + $0xf0] sm:$0xff] %vm79_vm0, %v379_v61 }
  0xfc   :  { %v427_v62 = vpop.f32.mrf.mxu2  ;;  %v475_v63 = vpop.f32.mrf.mxu3 }
  0xfd   :  { %527 = vst.msk [vmem:[%s1166_s2 + $0x170] sm:$0xff] %vm79_vm0, %v427_v62 }
  0xfe   :  { %543 = vst.msk [vmem:[%s1166_s2 + $0x1f0] sm:$0xff] %vm79_vm0, %v475_v63 }
 0x100   :  { %v334_v0 = vpop.f32.mrf.mxu0  ;;  %v382_v1 = vpop.f32.mrf.mxu1 }
 0x101   :  { %496 = vst.msk [vmem:[%s1166_s2 + $0x78] sm:$0xff] %vm79_vm0, %v334_v0 }
 0x102   :  { %512 = vst.msk [vmem:[%s1166_s2 + $0xf8] sm:$0xff] %vm79_vm0, %v382_v1 }
 0x104   :  { %v430_v2 = vpop.f32.mrf.mxu2  ;;  %v478_v3 = vpop.f32.mrf.mxu3 }
 0x105   :  { %528 = vst.msk [vmem:[%s1166_s2 + $0x178] sm:$0xff] %vm79_vm0, %v430_v2 }
 0x106   :  { %544 = vst.msk [vmem:[%s1166_s2 + $0x1f8] sm:$0xff] %vm79_vm0, %v478_v3 }

</bundles_post_ra>
